<compile_context>
chip_gen: v7x
topology: tpu7x:2x2x1
jax: 0.10.0
libtpu: 0.0.40
codegen_flags: <defaults>
</compile_context>

<pallas_src>
import functools

import jax
import jax.numpy as jnp
from jax.experimental import pallas as pl
from jax.experimental.pallas import tpu as pltpu

_INV_GAMMA = 1.0 / 2.2
_LANES = 128
_SUBLANES = 8
_MAX_TM = 2048  # rows per block -> 1 MiB per f32 block, 0.5 MiB per bf16 block


def _srgb_kernel(x_ref, o_ref, *, gain: float, inv_gamma: float):
    # Up-cast to f32 inside VMEM only (HBM traffic stays in the source dtype).
    x = x_ref[...].astype(jnp.float32)
    x = jnp.clip(x * gain, 0.0, 1.0)
    # x ** inv_gamma via EUP exp/log; x is in [0, 1] so log(x) <= 0 and
    # exp(inv_gamma * log(0)) = exp(-inf) = 0.  The where guards the x == 0
    # lane explicitly (cheap VPU select).
    y = jnp.where(x > 0.0, jnp.exp(inv_gamma * jnp.log(x)), 0.0)
    o_ref[...] = jnp.clip(y, 0.0, 1.0).astype(o_ref.dtype)


def srgb_tonemap(x: jax.Array, gain: float = 1.0) -> jax.Array:
    """clamp(clamp(gain*x, 0, 1) ** (1/2.2), 0, 1), elementwise, any shape."""
    orig_shape = x.shape
    out_dtype = x.dtype
    n = x.size

    # Flatten to a lane-dense slab. Pad only if the flat size is not already a
    # multiple of 8*128 (keeps rows a multiple of 8 so all blocks are legal).
    pad_unit = _SUBLANES * _LANES
    n_pad = (-n) % pad_unit
    x_flat = x.reshape(-1)
    if n_pad:
        x_flat = jnp.pad(x_flat, (0, n_pad))
    rows = x_flat.size // _LANES
    x2d = x_flat.reshape(rows, _LANES)

    # Large streaming tile; never larger than the array (rows is a multiple
    # of 8 by construction, so TM is always a legal sublane multiple).
    tm = min(_MAX_TM, rows)
    grid = (pl.cdiv(rows, tm),)

    kernel = functools.partial(
        _srgb_kernel, gain=float(gain), inv_gamma=float(_INV_GAMMA)
    )

    out2d = pl.pallas_call(
        kernel,
        out_shape=jax.ShapeDtypeStruct((rows, _LANES), out_dtype),
        grid_spec=pltpu.PrefetchScalarGridSpec(
            num_scalar_prefetch=0,
            grid=grid,
            in_specs=[pl.BlockSpec((tm, _LANES), lambda i: (i, 0))],
            out_specs=pl.BlockSpec((tm, _LANES), lambda i: (i, 0)),
        ),
        compiler_params=pltpu.CompilerParams(
            dimension_semantics=("parallel",),
        ),
    )(x2d)

    out_flat = out2d.reshape(-1)
    if n_pad:
        out_flat = out_flat[:n]
    return out_flat.reshape(orig_shape)


def _reference(x: jax.Array, gain: float) -> jax.Array:
    xf = x.astype(jnp.float32)
    y = jnp.clip(xf * gain, 0.0, 1.0)
    y = jnp.power(y, _INV_GAMMA)
    return jnp.clip(y, 0.0, 1.0)


if __name__ == "__main__":
    key = jax.random.PRNGKey(0)
    k1, k2, k3 = jax.random.split(key, 3)

    # 1) Spec-shaped NCHW f32 input (B=2, C=4, H=W=16), HDR-ish range.
    x = jax.random.uniform(k1, (2, 4, 16, 16), dtype=jnp.float32,
                           minval=0.0, maxval=4.0)
    gain = 0.5
    y = jax.block_until_ready(srgb_tonemap(x, gain=gain))
    ref = _reference(x, gain)
    assert y.shape == x.shape and y.dtype == x.dtype
    assert jnp.max(jnp.abs(y.astype(jnp.float32) - ref)) < 1e-4

    # 2) Native bf16 I/O path (no wrapper-side f32 round trip).
    xb = jax.random.uniform(k2, (2, 4, 16, 16), dtype=jnp.float32,
                            minval=0.0, maxval=4.0).astype(jnp.bfloat16)
    yb = jax.block_until_ready(srgb_tonemap(xb, gain=1.0))
    refb = _reference(xb, 1.0)
    assert yb.dtype == jnp.bfloat16 and yb.shape == xb.shape
    assert jnp.max(jnp.abs(yb.astype(jnp.float32) - refb)) < 3e-2

    # 3) Ragged size (not a multiple of 8*128) exercises the pad path.
    xr = jax.random.uniform(k3, (2, 3, 5, 7), dtype=jnp.float32,
                            minval=0.0, maxval=2.0)
    yr = jax.block_until_ready(srgb_tonemap(xr, gain=1.0))
    refr = _reference(xr, 1.0)
    assert yr.shape == xr.shape
    assert jnp.max(jnp.abs(yr - refr)) < 1e-4

    print("KERNEL_OK")
</pallas_src>

<mosaic_0001>
module attributes {stable_mosaic.version = 11 : i64} {
  func.func @_srgb_kernel(%arg0: i32, %arg1: memref<16x128xf32, #tpu.memory_space<vmem>>, %arg2: memref<16x128xf32, #tpu.memory_space<vmem>>) attributes {dimension_semantics = [#tpu.dimension_semantics<parallel>], iteration_bounds = array<i64: 1>, scalar_prefetch = 0 : i64, scratch_operands = 0 : i64, tpu.core_type = #tpu.core_type<tc>, window_params = [{transform_indices = @transform_0, window_bounds = array<i64: 16, 128>}, {transform_indices = @transform_1, window_bounds = array<i64: 16, 128>}]} {
    %c0 = arith.constant 0 : index
    %c0_0 = arith.constant 0 : index
    %0 = vector.load %arg1[%c0, %c0_0] : memref<16x128xf32, #tpu.memory_space<vmem>>, vector<16x128xf32>
    %cst = arith.constant 5.000000e-01 : f32
    %1 = vector.broadcast %cst : f32 to vector<16x128xf32>
    %2 = arith.mulf %0, %1 : vector<16x128xf32>
    %cst_1 = arith.constant 0.000000e+00 : f32
    %cst_2 = arith.constant 1.000000e+00 : f32
    %3 = vector.broadcast %cst_1 : f32 to vector<16x128xf32>
    %4 = arith.maximumf %3, %2 : vector<16x128xf32>
    %5 = vector.broadcast %cst_2 : f32 to vector<16x128xf32>
    %6 = arith.minimumf %5, %4 : vector<16x128xf32>
    %cst_3 = arith.constant 0.000000e+00 : f32
    %7 = vector.broadcast %cst_3 : f32 to vector<16x128xf32>
    %8 = arith.cmpf ogt, %6, %7 : vector<16x128xf32>
    %9 = math.log %6 : vector<16x128xf32>
    %cst_4 = arith.constant 0.454545468 : f32
    %10 = vector.broadcast %cst_4 : f32 to vector<16x128xf32>
    %11 = arith.mulf %10, %9 : vector<16x128xf32>
    %12 = math.exp %11 : vector<16x128xf32>
    %cst_5 = arith.constant 0.000000e+00 : f32
    %13 = vector.broadcast %cst_5 : f32 to vector<16x128xf32>
    %14 = arith.select %8, %12, %13 : vector<16x128xi1>, vector<16x128xf32>
    %cst_6 = arith.constant 0.000000e+00 : f32
    %cst_7 = arith.constant 1.000000e+00 : f32
    %15 = vector.broadcast %cst_6 : f32 to vector<16x128xf32>
    %16 = arith.maximumf %15, %14 : vector<16x128xf32>
    %17 = vector.broadcast %cst_7 : f32 to vector<16x128xf32>
    %18 = arith.minimumf %17, %16 : vector<16x128xf32>
    %c0_8 = arith.constant 0 : index
    %c0_9 = arith.constant 0 : index
    %19 = vector.load %arg2[%c0_8, %c0_9] : memref<16x128xf32, #tpu.memory_space<vmem>>, vector<16x128xf32>
    tpu.vector_store %arg2[%c0_8, %c0_9], %18 {strides = array<i32>} : memref<16x128xf32, #tpu.memory_space<vmem>>, vector<16x128xf32>,
    return
  }
  func.func @transform_0(%arg0: i32) -> (i32, i32) {
    %c0_i32 = arith.constant 0 : i32
    %c0_i32_0 = arith.constant 0 : i32
    return %arg0, %c0_i32 : i32, i32
  }
  func.func @transform_1(%arg0: i32) -> (i32, i32) {
    %c0_i32 = arith.constant 0 : i32
    %c0_i32_0 = arith.constant 0 : i32
    return %arg0, %c0_i32 : i32, i32
  }
}

</mosaic_0001>

<bundles_post_ra>
// kernel: tpu_custom_call.1
= control target key start
LH: loop header
LB: loop body
LE: loop exit
PB: predicated region body
PF: predicated region fallthrough
CT: control target
= control target key end

     0   :  { %6 = vsyncpa [#allocation3], 0  ;;  %s172_s0 = inlined_call_operand.hbm [shape: f32[16,128], index: 0, kind: input, shape index: {}]   ;;  %s173_s1 = inlined_call_operand.hbm [shape: f32[16,128], index: 1, kind: output, shape index: {}]  }
   0x1   :  { %7 = vsyncpa [#allocation4], 0  ;;  %s128_s6 = smov [#allocation2]   ;;  %s80_s10 = scalar_lea.hbm %s172_s0, 256 }
   0x2   :  { %s13_s7 = sshll.u32 %s128_s6, 4  ;;  %p81_p0 = scmp.ne.s32.totalorder %s172_s0, %s80_s10  ;;  %s14_s7 = int_to_ptr.vmem [resolvable:$true] %s13_s7 }
   0x3   :  { %p84_p1 = scmp.lt.u32.totalorder %s80_s10, %s172_s0 }
   0x5   :  { %p86_p2 = pnand %p84_p1, %p81_p0 }
   0x7   :  { %89 = shalt.err (!%p86_p2)
}
   0x8   :  { %s90_s15 = scalar_lea.vmem %s14_s7, 256  ;;  %p95_p4 = scmp.lt.s32.totalorder %s14_s7, %s14_s7 }
   0x9   :  { %p91_p3 = scmp.ne.s32.totalorder %s14_s7, %s90_s15  ;;  %p96_p5 = scmp.lt.s32.totalorder %s90_s15, %s90_s15 }
   0xb   :  { %p97_p6 = por %p96_p5, %p95_p4 }
   0xd   :  { %p98_p7 = pnand %p97_p6, %p91_p3 }
   0xf   :  { %101 = shalt.err (!%p98_p7)
}
  0x10   :  { %s129_s16 = smov 128   ;;  %s130_s17 = smov 8  }
  0x11   :  { %19 = dma.hbm_to_vmem [thread:$0]  %s172_s0, 256, %s14_s7, [#allocation3], %s129_s16, %s129_s16, %s130_s17  }
  0x12   :  { %124 = dma.done.wait [#allocation3], 256  }
  0x13   :  { %125 = vsyncadd [#allocation3], 4294967040  ;;  %v23_v0 = vld [vmem:[#allocation2] sm:$0xff]  ;;  %v24_v1 = vld [vmem:[#allocation2 + $0x8] sm:$0xff]  ;;  %s131_s0 = smov [#allocation5]  }
  0x14   :  { %v25_v2 = vmul.f32 0.5, %v23_v0  ;;  %v26_v3 = vmul.f32 0.5, %v24_v1  ;;  %s56_s20 = sshll.u32 %s131_s0, 4  ;;  %s57_s20 = int_to_ptr.vmem [resolvable:$true] %s56_s20 }
  0x15   :  { %s102_s21 = scalar_lea.vmem %s57_s20, 256  ;;  %p107_p9 = scmp.lt.s32.totalorder %s57_s20, %s57_s20 }
  0x16   :  { %v27_v4 = vmax.f32 %v25_v2, 0.0  ;;  %v28_v5 = vmax.f32 %v26_v3, 0.0  ;;  %p103_p8 = scmp.ne.s32.totalorder %s57_s20, %s102_s21  ;;  %p108_p10 = scmp.lt.s32.totalorder %s102_s21, %s102_s21 }
  0x18   :  { %v29_v6 = vmin.f32 %v27_v4, 1.0  ;;  %v30_v7 = vmin.f32 %v28_v5, 1.0  ;;  %p109_p11 = por %p108_p10, %p107_p9 }
  0x1a   :  { %72 = vlog2.f32 %v29_v6  ;;  %vm31_vm0 = vcmp.gt.f32.partialorder %v29_v6, 0.0  ;;  %vm32_vm1 = vcmp.gt.f32.partialorder %v30_v7, 0.0  ;;  %p110_p12 = pnand %p109_p11, %p103_p8 }
  0x1b   :  { %74 = vlog2.f32 %v30_v7 }
  0x24   :  { %v73_v8 = vpop.eup %72 }
  0x25   :  { %v75_v9 = vpop.eup %74  ;;  %v34_v10 = vmul.f32 0.6931472, %v73_v8 }
  0x26   :  { %v36_v11 = vmul.f32 0.6931472, %v75_v9 }
  0x27   :  { %v37_v12 = vmul.f32 0.45454547, %v34_v10 }
  0x28   :  { %v38_v13 = vmul.f32 0.45454547, %v36_v11 }
  0x29   :  { %v39_v14 = vmul.f32 1.442695, %v37_v12 }
  0x2a   :  { %v41_v15 = vmul.f32 1.442695, %v38_v13 }
  0x2b   :  { %76 = vpow2.f32 %v39_v14 }
  0x2c   :  { %78 = vpow2.f32 %v41_v15 }
  0x35   :  { %v77_v16 = vpop.eup %76 }
  0x36   :  { %v79_v17 = vpop.eup %78  ;;  %v43_v18 = vsel %vm31_vm0, %v77_v16, 0.0 }
  0x37   :  { %v45_v19 = vmax.f32 %v43_v18, 0.0  ;;  %v44_v20 = vsel %vm32_vm1, %v79_v17, 0.0 }
  0x38   :  { %v46_v21 = vmax.f32 %v44_v20, 0.0 }
  0x39   :  { %v47_v22 = vmin.f32 %v45_v19, 1.0 }
  0x3a   :  { %v48_v23 = vmin.f32 %v46_v21, 1.0 }
  0x3b   :  { %49 = vst [vmem:[#allocation5] sm:$0xff] %v47_v22 }
  0x3c   :  { %50 = vst [vmem:[#allocation5 + $0x8] sm:$0xff] %v48_v23 }
  0x3d   :  { %113 = shalt.err (!%p110_p12)
}
  0x3e   :  { %s114_s24 = scalar_lea.hbm %s173_s1, 256 }
  0x3f   :  { %p115_p13 = scmp.ne.s32.totalorder %s173_s1, %s114_s24  ;;  %p118_p0 = scmp.lt.u32.totalorder %s114_s24, %s173_s1 }
  0x41   :  { %p120_p1 = pnand %p118_p0, %p115_p13 }
  0x43   :  { %123 = shalt.err (!%p120_p1)
}
  0x44   :  { %62 = dma.vmem_to_hbm [thread:$0]  %s57_s20, 256, %s173_s1, [#allocation4], %s129_s16, %s129_s16, %s130_s17  }
  0x45   :  { %126 = dma.done.wait [#allocation4], 256  }
  0x46   :  { %127 = vsyncadd [#allocation4], 4294967040 }
  0x47   :  { %66 = vsyncpa [#allocation3], 1 }
  0x48   :  { %67 = vsyncpa [#allocation4], 1 }

</bundles_post_ra>
